<compile_context>
chip_gen: v6e
topology: v6e:2x2x1
jax: 0.10.0
libtpu: 0.0.40
codegen_flags: <defaults>
</compile_context>

<pallas_src>
import jax
import jax.numpy as jnp
from jax.experimental import pallas as pl
from jax.experimental.pallas import tpu as pltpu


_LANES = 128
_PAIR_LANES = 2 * _LANES                 # 128 samples x 2 classes per lane-row
_SAMPLE_GRANULE = 8 * _LANES             # 1024 samples -> one (8, 256) value granule
_LOGITS_TILE_BYTES = 4 * 1024 * 1024     # per-buffer logits budget
_VMEM_LIMIT_BYTES = 32 * 1024 * 1024     # explicit scoped-VMEM limit (fits v5e/v6e/v7x)


def _round_up(x, m):
    return ((x + m - 1) // m) * m


# -----------------------------------------------------------------------------
# C == 2 fast path: no wrapper transpose, fully parallel per-tile moment outputs.
# -----------------------------------------------------------------------------
def _aucm_c2_kernel(logits_ref, label_ref, out_ref):
    """Per-tile raw moments for the binary (C == 2) AUCM loss.

    logits_ref: (R, 256) native dtype -- the original row-major (N, 2) logits
                viewed as (N/128, 256); lane 2j = class-0, lane 2j+1 = class-1
                logit of sample 128*r + j.
    label_ref : (R, 256) int8 -- label at odd lanes, -1 at even lanes and at
                every padded / out-of-range position.
    out_ref   : (8, 256) f32 per-tile lane-wise partial sums, rows:
                0: #pos  1: #neg  2: sum y*pos  3: sum y*neg
                4: sum y^2*pos    5: sum y^2*neg    6,7: zero
    """
    x = logits_ref[...].astype(jnp.float32)                      # (R, 256)
    # Pair difference via a 1-lane rotate (cheap XLU op): at odd lanes 2j+1 this
    # is x1_j - x0_j.  Even lanes hold garbage and are masked by the -1 labels.
    d = x - pltpu.roll(x, shift=1, axis=1)
    y = 1.0 / (1.0 + jnp.exp(-d))        # sigmoid(x1 - x0) == softmax(x)[:, 1]
    y2 = y * y

    lab = label_ref[...].astype(jnp.int32)                       # (R, 256)
    pos = lab == 1
    neg = lab == 0                       # -1 (even lanes / padding) hits neither mask

    # jnp.where (select), not mask-multiply, so the ragged last tile's
    # out-of-bounds logits (possibly NaN) can never reach the sums.
    out_ref[0:1, :] = jnp.sum(jnp.where(pos, 1.0, 0.0), axis=0, keepdims=True)
    out_ref[1:2, :] = jnp.sum(jnp.where(neg, 1.0, 0.0), axis=0, keepdims=True)
    out_ref[2:3, :] = jnp.sum(jnp.where(pos, y, 0.0), axis=0, keepdims=True)
    out_ref[3:4, :] = jnp.sum(jnp.where(neg, y, 0.0), axis=0, keepdims=True)
    out_ref[4:5, :] = jnp.sum(jnp.where(pos, y2, 0.0), axis=0, keepdims=True)
    out_ref[5:6, :] = jnp.sum(jnp.where(neg, y2, 0.0), axis=0, keepdims=True)
    out_ref[6:8, :] = jnp.zeros((2, _PAIR_LANES), jnp.float32)


def _aucm_moments_c2(logits, target, tile_samples):
    n = logits.shape[0]
    itemsize = jnp.dtype(logits.dtype).itemsize

    # Pad only to a 1024-sample granule (never to a tile multiple).  When n is
    # already a multiple of 1024 the reshape below is a free row-major reshape
    # of the original (N, 2) buffer -- no extra HBM pass.
    n_pad = _round_up(n, _SAMPLE_GRANULE)
    flat = logits.reshape(-1)
    if n_pad != n:
        flat = jnp.pad(flat, (0, 2 * (n_pad - n)))
    rows = n_pad // _LANES                                # always a multiple of 8
    logits2d = flat.reshape(rows, _PAIR_LANES)

    # Largest tile under the per-buffer budget; row count is a multiple of 32 so
    # tiled int8/bf16 blocks sit on native sublane packing.  f32 @ 4 MiB ->
    # 4096 rows = 524288 samples per grid step (1M for bf16): per-step overhead
    # amortized, DMA near the HBM roofline.
    if tile_samples is None:
        cap_rows = max(32, (_LOGITS_TILE_BYTES // (_PAIR_LANES * itemsize)) // 32 * 32)
    else:
        assert tile_samples % (32 * _LANES) == 0, \
            "tile_samples must be a multiple of 4096"
        cap_rows = tile_samples // _LANES
    if rows <= cap_rows:
        tile_rows, num_tiles = rows, 1                    # block == full array
    else:
        tile_rows = cap_rows
        num_tiles = pl.cdiv(rows, tile_rows)              # last tile may be ragged
    rows_grid = num_tiles * tile_rows

    # int8 labels interleaved so they line up with the odd-lane y_pred values:
    # 2 bytes/sample of DMA (vs 4 for f32); -1 marks even lanes, the 1024-sample
    # pad and the ragged grid tail, excluding them from both masks.
    lab = target.reshape(n).astype(jnp.int8)
    lab = jnp.stack([jnp.full((n,), -1, jnp.int8), lab], axis=-1).reshape(-1)
    lab = jnp.pad(lab, (0, rows_grid * _PAIR_LANES - 2 * n), constant_values=-1)
    labels2d = lab.reshape(rows_grid, _PAIR_LANES)

    cost = pl.CostEstimate(
        flops=int(14 * rows_grid * _PAIR_LANES),
        transcendentals=int(rows_grid * _PAIR_LANES),
        bytes_accessed=int(rows * _PAIR_LANES * itemsize
                           + rows_grid * _PAIR_LANES
                           + num_tiles * 8 * _PAIR_LANES * 4),
    )

    partial = pl.pallas_call(
        _aucm_c2_kernel,
        out_shape=jax.ShapeDtypeStruct((num_tiles * 8, _PAIR_LANES), jnp.float32),
        grid_spec=pltpu.PrefetchScalarGridSpec(
            num_scalar_prefetch=0,
            grid=(num_tiles,),
            in_specs=[
                pl.BlockSpec((tile_rows, _PAIR_LANES), lambda i: (i, 0)),  # logits view
                pl.BlockSpec((tile_rows, _PAIR_LANES), lambda i: (i, 0)),  # int8 labels
            ],
            out_specs=pl.BlockSpec((8, _PAIR_LANES), lambda i: (i, 0)),
        ),
        compiler_params=pltpu.CompilerParams(
            # No carried state between tiles -> fully parallel grid (uses both
            # v7x TensorCores; neutral on single-TC v5e/v6e).
            dimension_semantics=("parallel",),
            vmem_limit_bytes=_VMEM_LIMIT_BYTES,
        ),
        cost_estimate=cost,
    )(logits2d, labels2d)

    # Tiny finalize: sum the per-tile / per-lane partial sums (num_tiles x 6 x 256).
    return jnp.sum(partial.reshape(num_tiles, 8, _PAIR_LANES)[:, :6, :], axis=(0, 2))


# -----------------------------------------------------------------------------
# General C > 2 fallback (lane-dense transposed layout, SMEM moment accumulators).
# -----------------------------------------------------------------------------
def _aucm_general_kernel(logits_ref, label_ref, out_ref, acc_ref):
    # logits_ref: (C, T) native dtype (lane-dense over the batch).
    # label_ref : (1, T) int8; -1 marks padding / the ragged grid tail.
    # out_ref   : SMEM (6,) f32 raw moments, written on the last grid step.
    # acc_ref   : SMEM (6,) f32 running sums.
    pid = pl.program_id(0)

    @pl.when(pid == 0)
    def _init():
        for i in range(6):
            acc_ref[i] = jnp.float32(0.0)

    x = logits_ref[...].astype(jnp.float32)               # (C, T)
    m = jnp.max(x, axis=0, keepdims=True)
    e = jnp.exp(x - m)
    denom = jnp.sum(e, axis=0, keepdims=True)
    y = e[1:2, :] / denom                                  # exact class-1 probability
    y2 = y * y

    lab = label_ref[...].astype(jnp.int32)                 # (1, T)
    pos = lab == 1
    neg = lab == 0

    acc_ref[0] += jnp.sum(jnp.where(pos, 1.0, 0.0))
    acc_ref[1] += jnp.sum(jnp.where(neg, 1.0, 0.0))
    acc_ref[2] += jnp.sum(jnp.where(pos, y, 0.0))
    acc_ref[3] += jnp.sum(jnp.where(neg, y, 0.0))
    acc_ref[4] += jnp.sum(jnp.where(pos, y2, 0.0))
    acc_ref[5] += jnp.sum(jnp.where(neg, y2, 0.0))

    @pl.when(pid == pl.num_programs(0) - 1)
    def _finalize():
        for i in range(6):
            out_ref[i] = acc_ref[i]


def _aucm_moments_general(logits, target, tile_samples):
    # TODO(synk): the general C > 2 fallback keeps one wrapper-side transpose
    # (an extra HBM pass over the logits); the C == 2 fast path avoids it.
    n, c = logits.shape
    itemsize = jnp.dtype(logits.dtype).itemsize

    n128 = _round_up(n, _LANES)
    logits_t = jnp.transpose(logits)                       # (C, N) lane-dense
    if n128 != n:
        logits_t = jnp.pad(logits_t, ((0, 0), (0, n128 - n)))

    if tile_samples is None:
        tile_n = max(_LANES,
                     (_LOGITS_TILE_BYTES // max(1, c * itemsize)) // _LANES * _LANES)
    else:
        assert tile_samples % _LANES == 0
        tile_n = tile_samples
    tile_n = min(tile_n, n128)
    num_tiles = pl.cdiv(n128, tile_n)
    n_grid = num_tiles * tile_n

    lab = jnp.pad(target.reshape(n).astype(jnp.int8), (0, n_grid - n),
                  constant_values=-1)
    labels_row = lab.reshape(1, n_grid)

    cost = pl.CostEstimate(
        flops=int(12 * n_grid * c),
        transcendentals=int(n_grid * c),
        bytes_accessed=int(n128 * c * itemsize + n_grid + 6 * 4),
    )

    moments = pl.pallas_call(
        _aucm_general_kernel,
        out_shape=jax.ShapeDtypeStruct((6,), jnp.float32),
        grid_spec=pltpu.PrefetchScalarGridSpec(
            num_scalar_prefetch=0,
            grid=(num_tiles,),
            in_specs=[
                pl.BlockSpec((c, tile_n), lambda i: (0, i)),
                pl.BlockSpec((1, tile_n), lambda i: (0, i)),
            ],
            out_specs=pl.BlockSpec(memory_space=pltpu.SMEM),
            scratch_shapes=[pltpu.SMEM((6,), jnp.float32)],
        ),
        compiler_params=pltpu.CompilerParams(
            dimension_semantics=("arbitrary",),
            vmem_limit_bytes=_VMEM_LIMIT_BYTES,
        ),
        cost_estimate=cost,
    )(logits_t, labels_row)
    return moments


# -----------------------------------------------------------------------------
# Loss finalize (trivial 6-scalar combine) and public entry point.
# -----------------------------------------------------------------------------
def _loss_from_moments(moments, a, b, alpha, margin, n):
    n_pos, n_neg = moments[0], moments[1]
    s_yp, s_yn = moments[2], moments[3]
    s_y2p, s_y2n = moments[4], moments[5]
    inv_n = jnp.float32(1.0 / n)
    p = n_pos * inv_n                                      # imratio=None path: batch ratio
    mean_pos_sq = (s_y2p - 2.0 * a * s_yp + a * a * n_pos) * inv_n
    mean_neg_sq = (s_y2n - 2.0 * b * s_yn + b * b * n_neg) * inv_n
    mean_cross = (p * s_yn - (1.0 - p) * s_yp) * inv_n
    loss = (
        (1.0 - p) * mean_pos_sq
        + p * mean_neg_sq
        + 2.0 * alpha * (p * (1.0 - p) * jnp.float32(margin) + mean_cross)
        - p * (1.0 - p) * alpha * alpha
    )
    return jnp.reshape(loss, (1,)).astype(jnp.float32)


def aucm_loss(logits, target, a, b, alpha, margin=1.0, *, tile_samples=None):
    """Pallas implementation of AUCMLoss.forward (imratio=None path).

    logits: (N, C) float (any float dtype; DMA'd in its native dtype).
    target: (N,) labels in {0, 1}.
    a, b, alpha: shape-(1,) float32 parameters.
    Returns: shape-(1,) float32 loss (same shape as the PyTorch module).
    """
    n, c = logits.shape
    a = jnp.reshape(a, (1,)).astype(jnp.float32)
    b = jnp.reshape(b, (1,)).astype(jnp.float32)
    alpha = jnp.reshape(alpha, (1,)).astype(jnp.float32)

    if c == 2:
        moments = _aucm_moments_c2(logits, target, tile_samples)
    else:
        moments = _aucm_moments_general(logits, target, tile_samples)
    return _loss_from_moments(moments, a, b, alpha, float(margin), n)


def _reference(logits, target, a, b, alpha, margin=1.0):
    # Pure-JAX reference mirroring the PyTorch forward exactly.
    y_pred = jax.nn.softmax(logits.astype(jnp.float32), axis=1)[:, 1:2]
    y_true = target.astype(jnp.float32).reshape(-1, 1)
    p = jnp.sum((y_true == 1.0).astype(jnp.float32)) / y_true.shape[0]
    loss = (
        (1 - p) * jnp.mean((y_pred - a) ** 2 * (y_true == 1.0).astype(jnp.float32))
        + p * jnp.mean((y_pred - b) ** 2 * (y_true == 0.0).astype(jnp.float32))
        + 2 * alpha * (
            p * (1 - p) * margin
            + jnp.mean(
                p * y_pred * (y_true == 0.0).astype(jnp.float32)
                - (1 - p) * y_pred * (y_true == 1.0).astype(jnp.float32)
            )
        )
        - p * (1 - p) * alpha ** 2
    )
    return loss


if __name__ == "__main__":
    key = jax.random.PRNGKey(0)
    k1, k2, k3, k4, k5, k6 = jax.random.split(key, 6)
    margin = 1.0

    # --- test 1: module-style small binary input, zero-initialized a/b/alpha ---
    n1 = 8
    logits1 = jax.random.normal(k1, (n1, 2), dtype=jnp.float32)
    target1 = (jax.random.uniform(k2, (n1,)) > 0.5).astype(jnp.float32)
    zero = jnp.zeros((1,), jnp.float32)
    out1 = jax.block_until_ready(aucm_loss(logits1, target1, zero, zero, zero, margin))
    ref1 = _reference(logits1, target1, zero, zero, zero, margin)
    assert out1.shape == (1,)
    assert jnp.allclose(out1, ref1, atol=1e-5, rtol=1e-4), (out1, ref1)

    # --- test 2: bf16 logits, multi-tile grid + ragged last tile, nonzero params ---
    n2 = 9000
    logits2 = jax.random.normal(k3, (n2, 2), dtype=jnp.bfloat16)
    target2 = (jax.random.uniform(k4, (n2,)) > 0.3).astype(jnp.float32)
    a2 = jnp.full((1,), 0.25, jnp.float32)
    b2 = jnp.full((1,), 0.10, jnp.float32)
    al2 = jnp.full((1,), 0.50, jnp.float32)
    out2 = jax.block_until_ready(
        aucm_loss(logits2, target2, a2, b2, al2, margin, tile_samples=4096))
    ref2 = _reference(logits2, target2, a2, b2, al2, margin)
    assert jnp.allclose(out2, ref2, atol=1e-4, rtol=2e-3), (out2, ref2)

    # --- test 3: general C > 2 fallback path (multi-tile, ragged last tile) ---
    n3 = 300
    logits3 = jax.random.normal(k5, (n3, 4), dtype=jnp.float32)
    target3 = (jax.random.uniform(k6, (n3,)) > 0.5).astype(jnp.float32)
    out3 = jax.block_until_ready(
        aucm_loss(logits3, target3, a2, b2, al2, margin, tile_samples=256))
    ref3 = _reference(logits3, target3, a2, b2, al2, margin)
    assert jnp.allclose(out3, ref3, atol=1e-5, rtol=1e-4), (out3, ref3)

    print("KERNEL_OK")
</pallas_src>

<mosaic_0001>
module attributes {stable_mosaic.version = 11 : i64} {
  func.func @_aucm_c2_kernel(%arg0: i32, %arg1: memref<8x256xf32, #tpu.memory_space<vmem>>, %arg2: memref<8x256xi8, #tpu.memory_space<vmem>>, %arg3: memref<8x256xf32, #tpu.memory_space<vmem>>) attributes {dimension_semantics = [#tpu.dimension_semantics<parallel>], iteration_bounds = array<i64: 1>, scalar_prefetch = 0 : i64, scratch_operands = 0 : i64, tpu.core_type = #tpu.core_type<tc>, window_params = [{transform_indices = @transform_0, window_bounds = array<i64: 8, 256>}, {transform_indices = @transform_1, window_bounds = array<i64: 8, 256>}, {transform_indices = @transform_2, window_bounds = array<i64: 8, 256>}]} {
    %c0 = arith.constant 0 : index
    %c0_0 = arith.constant 0 : index
    %0 = vector.load %arg1[%c0, %c0_0] : memref<8x256xf32, #tpu.memory_space<vmem>>, vector<8x256xf32>
    %c1_i32 = arith.constant 1 : i32
    %1 = tpu.dynamic_rotate %0 by %c1_i32 dim 1 : vector<8x256xf32>, i32 -> vector<8x256xf32>
    %2 = arith.subf %0, %1 : vector<8x256xf32>
    %cst = arith.constant 0.000000e+00 : f32
    %3 = vector.broadcast %cst : f32 to vector<8x256xf32>
    %4 = arith.subf %3, %2 : vector<8x256xf32>
    %5 = math.exp %4 : vector<8x256xf32>
    %cst_1 = arith.constant 1.000000e+00 : f32
    %6 = vector.broadcast %cst_1 : f32 to vector<8x256xf32>
    %7 = arith.addf %6, %5 : vector<8x256xf32>
    %cst_2 = arith.constant 1.000000e+00 : f32
    %8 = vector.broadcast %cst_2 : f32 to vector<8x256xf32>
    %9 = arith.divf %8, %7 : vector<8x256xf32>
    %10 = arith.mulf %9, %9 : vector<8x256xf32>
    %c0_3 = arith.constant 0 : index
    %c0_4 = arith.constant 0 : index
    %11 = vector.load %arg2[%c0_3, %c0_4] : memref<8x256xi8, #tpu.memory_space<vmem>>, vector<8x256xi8>
    %12 = arith.extsi %11 : vector<8x256xi8> to vector<8x256xi32>
    %c1_i32_5 = arith.constant 1 : i32
    %13 = vector.broadcast %c1_i32_5 : i32 to vector<8x256xi32>
    %14 = arith.cmpi eq, %12, %13 : vector<8x256xi32>
    %c0_i32 = arith.constant 0 : i32
    %15 = vector.broadcast %c0_i32 : i32 to vector<8x256xi32>
    %16 = arith.cmpi eq, %12, %15 : vector<8x256xi32>
    %cst_6 = arith.constant 1.000000e+00 : f32
    %cst_7 = arith.constant 0.000000e+00 : f32
    %17 = vector.broadcast %cst_6 : f32 to vector<8x256xf32>
    %18 = vector.broadcast %cst_7 : f32 to vector<8x256xf32>
    %19 = arith.select %14, %17, %18 : vector<8x256xi1>, vector<8x256xf32>
    %cst_8 = arith.constant dense<0.000000e+00> : vector<256xf32>
    %20 = vector.multi_reduction <add>, %19, %cst_8 [0] : vector<8x256xf32> to vector<256xf32>
    %21 = vector.shape_cast %20 : vector<256xf32> to vector<1x256xf32>
    %c0_9 = arith.constant 0 : index
    %c0_10 = arith.constant 0 : index
    %22 = vector.load %arg3[%c0_9, %c0_10] : memref<8x256xf32, #tpu.memory_space<vmem>>, vector<1x256xf32>
    tpu.vector_store %arg3[%c0_9, %c0_10], %21 {strides = array<i32>} : memref<8x256xf32, #tpu.memory_space<vmem>>, vector<1x256xf32>,
    %cst_11 = arith.constant 1.000000e+00 : f32
    %cst_12 = arith.constant 0.000000e+00 : f32
    %23 = vector.broadcast %cst_11 : f32 to vector<8x256xf32>
    %24 = vector.broadcast %cst_12 : f32 to vector<8x256xf32>
    %25 = arith.select %16, %23, %24 : vector<8x256xi1>, vector<8x256xf32>
    %cst_13 = arith.constant dense<0.000000e+00> : vector<256xf32>
    %26 = vector.multi_reduction <add>, %25, %cst_13 [0] : vector<8x256xf32> to vector<256xf32>
    %27 = vector.shape_cast %26 : vector<256xf32> to vector<1x256xf32>
    %c1 = arith.constant 1 : index
    %c0_14 = arith.constant 0 : index
    %28 = vector.load %arg3[%c1, %c0_14] : memref<8x256xf32, #tpu.memory_space<vmem>>, vector<1x256xf32>
    tpu.vector_store %arg3[%c1, %c0_14], %27 {strides = array<i32>} : memref<8x256xf32, #tpu.memory_space<vmem>>, vector<1x256xf32>,
    %cst_15 = arith.constant 0.000000e+00 : f32
    %29 = vector.broadcast %cst_15 : f32 to vector<8x256xf32>
    %30 = arith.select %14, %9, %29 : vector<8x256xi1>, vector<8x256xf32>
    %cst_16 = arith.constant dense<0.000000e+00> : vector<256xf32>
    %31 = vector.multi_reduction <add>, %30, %cst_16 [0] : vector<8x256xf32> to vector<256xf32>
    %32 = vector.shape_cast %31 : vector<256xf32> to vector<1x256xf32>
    %c2 = arith.constant 2 : index
    %c0_17 = arith.constant 0 : index
    %33 = vector.load %arg3[%c2, %c0_17] : memref<8x256xf32, #tpu.memory_space<vmem>>, vector<1x256xf32>
    tpu.vector_store %arg3[%c2, %c0_17], %32 {strides = array<i32>} : memref<8x256xf32, #tpu.memory_space<vmem>>, vector<1x256xf32>,
    %cst_18 = arith.constant 0.000000e+00 : f32
    %34 = vector.broadcast %cst_18 : f32 to vector<8x256xf32>
    %35 = arith.select %16, %9, %34 : vector<8x256xi1>, vector<8x256xf32>
    %cst_19 = arith.constant dense<0.000000e+00> : vector<256xf32>
    %36 = vector.multi_reduction <add>, %35, %cst_19 [0] : vector<8x256xf32> to vector<256xf32>
    %37 = vector.shape_cast %36 : vector<256xf32> to vector<1x256xf32>
    %c3 = arith.constant 3 : index
    %c0_20 = arith.constant 0 : index
    %38 = vector.load %arg3[%c3, %c0_20] : memref<8x256xf32, #tpu.memory_space<vmem>>, vector<1x256xf32>
    tpu.vector_store %arg3[%c3, %c0_20], %37 {strides = array<i32>} : memref<8x256xf32, #tpu.memory_space<vmem>>, vector<1x256xf32>,
    %cst_21 = arith.constant 0.000000e+00 : f32
    %39 = vector.broadcast %cst_21 : f32 to vector<8x256xf32>
    %40 = arith.select %14, %10, %39 : vector<8x256xi1>, vector<8x256xf32>
    %cst_22 = arith.constant dense<0.000000e+00> : vector<256xf32>
    %41 = vector.multi_reduction <add>, %40, %cst_22 [0] : vector<8x256xf32> to vector<256xf32>
    %42 = vector.shape_cast %41 : vector<256xf32> to vector<1x256xf32>
    %c4 = arith.constant 4 : index
    %c0_23 = arith.constant 0 : index
    %43 = vector.load %arg3[%c4, %c0_23] : memref<8x256xf32, #tpu.memory_space<vmem>>, vector<1x256xf32>
    tpu.vector_store %arg3[%c4, %c0_23], %42 {strides = array<i32>} : memref<8x256xf32, #tpu.memory_space<vmem>>, vector<1x256xf32>,
    %cst_24 = arith.constant 0.000000e+00 : f32
    %44 = vector.broadcast %cst_24 : f32 to vector<8x256xf32>
    %45 = arith.select %16, %10, %44 : vector<8x256xi1>, vector<8x256xf32>
    %cst_25 = arith.constant dense<0.000000e+00> : vector<256xf32>
    %46 = vector.multi_reduction <add>, %45, %cst_25 [0] : vector<8x256xf32> to vector<256xf32>
    %47 = vector.shape_cast %46 : vector<256xf32> to vector<1x256xf32>
    %c5 = arith.constant 5 : index
    %c0_26 = arith.constant 0 : index
    %48 = vector.load %arg3[%c5, %c0_26] : memref<8x256xf32, #tpu.memory_space<vmem>>, vector<1x256xf32>
    tpu.vector_store %arg3[%c5, %c0_26], %47 {strides = array<i32>} : memref<8x256xf32, #tpu.memory_space<vmem>>, vector<1x256xf32>,
    %cst_27 = arith.constant 0.000000e+00 : f32
    %49 = vector.broadcast %cst_27 : f32 to vector<2x256xf32>
    %c6 = arith.constant 6 : index
    %c0_28 = arith.constant 0 : index
    %50 = vector.load %arg3[%c6, %c0_28] : memref<8x256xf32, #tpu.memory_space<vmem>>, vector<2x256xf32>
    tpu.vector_store %arg3[%c6, %c0_28], %49 {strides = array<i32>} : memref<8x256xf32, #tpu.memory_space<vmem>>, vector<2x256xf32>,
    return
  }
  func.func @transform_0(%arg0: i32) -> (i32, i32) {
    %c0_i32 = arith.constant 0 : i32
    %c0_i32_0 = arith.constant 0 : i32
    return %arg0, %c0_i32 : i32, i32
  }
  func.func @transform_1(%arg0: i32) -> (i32, i32) {
    %c0_i32 = arith.constant 0 : i32
    %c0_i32_0 = arith.constant 0 : i32
    return %arg0, %c0_i32 : i32, i32
  }
  func.func @transform_2(%arg0: i32) -> (i32, i32) {
    %c0_i32 = arith.constant 0 : i32
    %c0_i32_0 = arith.constant 0 : i32
    return %arg0, %c0_i32 : i32, i32
  }
}

</mosaic_0001>

<bundles_post_ra>
// kernel: tpu_custom_call.1
= control target key start
LH: loop header
LB: loop body
LE: loop exit
PB: predicated region body
PF: predicated region fallthrough
CT: control target
= control target key end

     0   :  { %7 = vsyncpa [#allocation3], 0  ;;  %s485_s0 = inlined_call_operand.hbm [shape: f32[8,256], index: 0, kind: input, shape index: {}]   ;;  %s486_s1 = inlined_call_operand.hbm [shape: s8[8,256], index: 1, kind: input, shape index: {}]   ;;  %s487_s2 = inlined_call_operand.hbm [shape: f32[8,256], index: 2, kind: output, shape index: {}]  }
   0x1   :  { %8 = vsyncpa [#allocation6], 0 }
   0x2   :  { %9 = vsyncpa [#allocation4], 0  ;;  %s381_s9 = smov [#allocation2]   ;;  %s382_s11 = smov [#allocation5]  }
   0x3   :  { %s16_s10 = sshll.u32 %s381_s9, 4  ;;  %s26_s12 = sshll.u32 %s382_s11, 4  ;;  %s17_s10 = int_to_ptr.vmem [resolvable:$true] %s16_s10  ;;  %s27_s12 = int_to_ptr.vmem [resolvable:$true] %s26_s12 }
   0x4   :  { %s323_s13 = scalar_lea.vmem %s17_s10, 256  ;;  %p328_p1 = scmp.lt.s32.totalorder %s17_s10, %s17_s10 }
   0x5   :  { %p324_p0 = scmp.ne.s32.totalorder %s17_s10, %s323_s13  ;;  %p329_p2 = scmp.lt.s32.totalorder %s323_s13, %s323_s13 }
   0x7   :  { %p330_p3 = por %p329_p2, %p328_p1 }
   0x9   :  { %p331_p4 = pnand %p330_p3, %p324_p0 }
   0xb   :  { %334 = shalt.err (!%p331_p4)
}
   0xc   :  { %19 = dma.hbm_to_vmem [thread:$0]  %s485_s0, 256, %s17_s10, [#allocation3]  }
   0xd   :  { %s343_s16 = scalar_lea.vmem %s27_s12, 64  ;;  %p348_p6 = scmp.lt.s32.totalorder %s27_s12, %s27_s12 }
   0xe   :  { %p344_p5 = scmp.ne.s32.totalorder %s27_s12, %s343_s16  ;;  %p349_p7 = scmp.lt.s32.totalorder %s343_s16, %s343_s16 }
  0x10   :  { %p350_p8 = por %p349_p7, %p348_p6 }
  0x12   :  { %p351_p9 = pnand %p350_p8, %p344_p5 }
  0x14   :  { %354 = shalt.err (!%p351_p9)
}
  0x15   :  { %29 = dma.hbm_to_vmem [thread:$0]  %s486_s1, 64, %s27_s12, [#allocation6]  }
  0x16   :  { %375 = dma.done.wait [#allocation3], 256  }
  0x17   :  { %376 = vsyncadd [#allocation3], 4294967040 }
  0x18   :  { %377 = dma.done.wait [#allocation6], 64  }
  0x19   :  { %378 = vsyncadd [#allocation6], 4294967232  ;;  %v383_v0 = vmov 0.0   ;;  %v408_v1 = vld [vmem:[#allocation2] sm:$0xff]  ;;  %v63_v2 = vld [vmem:[#allocation5] sm:$0xf]  ;;  %v42_v28 = vlaneseq }
  0x1a   :  { %283 = vst [vmem:[#allocation7] sm:$0xc0] %v383_v0  ;;  %284 = vst [vmem:[#allocation7 + $0x8] sm:$0xc0] %v383_v0  ;;  %s384_s0 = smov 1   ;;  %v64_v3 = vunpack.c.0.s8 %v63_v2  ;;  %v65_v4 = vunpack.c.1.s8 %v63_v2  ;;  %v37_v5 = vld [vmem:[#allocation2 + $0x8] sm:$0xff] }
  0x1b   :  { %38 = vrot.lane.b32.xlu0 %v408_v1, %s384_s0  ;;  %v385_v22 = vmov 1966171168   ;;  %v91_v34 = vshrl.u32 %v42_v28, 7  ;;  %vm441_vm4 = vcmp.lt.s32.totalorder %v42_v28, 256  ;;  %v43_v51 = vand.u32 127, %v42_v28  ;;  %s386_s1 = smov [#allocation7]  }
  0x1c   :  { %vm411_vm0 = vcmp.eq.s32.totalorder %v64_v3, 1  ;;  %vm415_vm1 = vcmp.eq.s32.totalorder %v65_v4, 1  ;;  %vm419_vm2 = vcmp.eq.s32.totalorder %v64_v3, 0  ;;  %vm423_vm3 = vcmp.eq.s32.totalorder %v65_v4, 0  ;;  %s291_s19 = sshll.u32 %s386_s1, 4  ;;  %s292_s19 = int_to_ptr.vmem [resolvable:$true] %s291_s19 }
  0x1d   :  { %v70_v10 = vsel %vm411_vm0, 1.0, %v383_v0  ;;  %v71_v11 = vsel %vm415_vm1, 1.0, %v383_v0  ;;  %v108_v12 = vsel %vm419_vm2, 1.0, %v383_v0  ;;  %v109_v13 = vsel %vm423_vm3, 1.0, %v383_v0  ;;  %s355_s20 = scalar_lea.vmem %s292_s19, 256  ;;  %p360_p11 = scmp.lt.s32.totalorder %s292_s19, %s292_s19 }
  0x1e   :  { %v72_v14 = vrot.slane %v70_v10, 4  ;;  %v78_v15 = vrot.slane %v71_v11, 4  ;;  %v110_v16 = vrot.slane %v108_v12, 4  ;;  %v116_v17 = vrot.slane %v109_v13, 4  ;;  %p356_p10 = scmp.ne.s32.totalorder %s292_s19, %s355_s20  ;;  %p361_p12 = scmp.lt.s32.totalorder %s355_s20, %s355_s20 }
  0x1f   :  { %40 = vrot.lane.b32.xlu0 %v37_v5, %s384_s0  ;;  %v88_v23 = vunpack.c.l.s4 %v385_v22  ;;  %vm44_vm5 = vcmp.lt.s32.totalorder %v43_v51, 1 }
  0x20   :  { %v73_v18 = vadd.f32 %v72_v14, %v70_v10  ;;  %v79_v19 = vadd.f32 %v78_v15, %v71_v11  ;;  %v111_v20 = vadd.f32 %v110_v16, %v108_v12  ;;  %v117_v21 = vadd.f32 %v116_v17, %v109_v13  ;;  %p362_p13 = por %p361_p12, %p360_p11 }
  0x21   :  { %v89_v33 = vunpack.c.0.s8 %v88_v23 }
  0x22   :  { %v74_v24 = vrot.slane %v73_v18, 2  ;;  %v80_v25 = vrot.slane %v79_v19, 2  ;;  %v112_v26 = vrot.slane %v111_v20, 2  ;;  %v118_v27 = vrot.slane %v117_v21, 2  ;;  %p363_p0 = pnand %p362_p13, %p356_p10 }
  0x23   :  { %v435_v44 = vsub.s32 %v89_v33, %v91_v34 }
  0x24   :  { %v75_v29 = vadd.f32 %v74_v24, %v73_v18  ;;  %v81_v30 = vadd.f32 %v80_v25, %v79_v19  ;;  %v113_v31 = vadd.f32 %v112_v26, %v111_v20  ;;  %v119_v32 = vadd.f32 %v118_v27, %v117_v21 }
  0x26   :  { %v76_v35 = vrot.slane %v75_v29, 1  ;;  %v82_v36 = vrot.slane %v81_v30, 1  ;;  %v114_v37 = vrot.slane %v113_v31, 1  ;;  %v120_v38 = vrot.slane %v119_v32, 1 }
  0x28   :  { %v77_v39 = vadd.f32 %v76_v35, %v75_v29  ;;  %v83_v40 = vadd.f32 %v82_v36, %v81_v30  ;;  %v115_v41 = vadd.f32 %v114_v37, %v113_v31  ;;  %v121_v42 = vadd.f32 %v120_v38, %v119_v32 }
  0x2a   :  { %v86_v43 = vcombine.low %v77_v39, %v83_v40  ;;  %v124_v45 = vcombine.low %v115_v41, %v121_v42 }
  0x2c   :  { %v93_v46 = vrot.slane %v86_v43, %v435_v44  ;;  %v131_v47 = vrot.slane %v124_v45, %v435_v44 }
  0x2e   :  { %v100_v48 = vrot.slane %v93_v46, %v435_v44  ;;  %v138_v49 = vrot.slane %v131_v47, %v435_v44 }
  0x30   :  { %106 = vst.msk [vmem:[#allocation7] ss:$8 sm:$0x3] %vm441_vm4, %v100_v48  ;;  %141 = vst.msk [vmem:[#allocation7 + $0x1] ss:$8 sm:$0x3] %vm441_vm4, %v138_v49 }
  0x8d   :  { %v39_v52 = vpop.permute.xlu0 %38 }
  0x91   :  { %v41_v53 = vpop.permute.xlu0 %40 }
  0x92   :  { %v45_v54 = vsel %vm44_vm5, %v39_v52, %v41_v53  ;;  %v46_v55 = vsel %vm44_vm5, %v41_v53, %v39_v52 }
  0x93   :  { %v47_v56 = vsub.f32 %v408_v1, %v46_v55  ;;  %v48_v57 = vsub.f32 %v37_v5, %v45_v54 }
  0x95   :  { %v49_v58 = vsub.f32 0.0, %v47_v56  ;;  %v50_v59 = vsub.f32 0.0, %v48_v57 }
  0x97   :  { %v51_v60 = vmul.f32 1.442695, %v49_v58  ;;  %v53_v61 = vmul.f32 1.442695, %v50_v59 }
  0x99   :  { %307 = vpow2.f32 %v51_v60 }
  0x9a   :  { %309 = vpow2.f32 %v53_v61 }
  0xa6   :  { %v308_v62 = vpop.eup %307 }
  0xa7   :  { %v310_v63 = vpop.eup %309  ;;  %v55_v0 = vadd.f32 1.0, %v308_v62 }
  0xa8   :  { %v56_v2 = vadd.f32 1.0, %v310_v63 }
  0xa9   :  { %311 = vrcp.f32 %v55_v0 }
  0xaa   :  { %313 = vrcp.f32 %v56_v2 }
  0xb6   :  { %v312_v3 = vpop.eup %311 }
  0xb7   :  { %v314_v4 = vpop.eup %313  ;;  %v61_v10 = vmul.f32 %v312_v3, %v312_v3  ;;  %v143_v11 = vsel %vm411_vm0, %v312_v3, 0.0  ;;  %v178_v1 = vsel %vm419_vm2, %v312_v3, 0.0 }
  0xb8   :  { %v62_v5 = vmul.f32 %v314_v4, %v314_v4  ;;  %v144_v12 = vsel %vm415_vm1, %v314_v4, 0.0  ;;  %v145_v13 = vrot.slane %v143_v11, 4  ;;  %v179_v14 = vsel %vm423_vm3, %v314_v4, 0.0 }
  0xb9   :  { %v151_v15 = vrot.slane %v144_v12, 4  ;;  %v180_v16 = vrot.slane %v178_v1, 4  ;;  %v186_v17 = vrot.slane %v179_v14, 4  ;;  %v213_v18 = vsel %vm411_vm0, %v61_v10, 0.0 }
  0xba   :  { %v146_v19 = vadd.f32 %v145_v13, %v143_v11  ;;  %v214_v20 = vsel %vm415_vm1, %v62_v5, 0.0  ;;  %v215_v21 = vrot.slane %v213_v18, 4  ;;  %v248_v22 = vsel %vm419_vm2, %v61_v10, 0.0 }
  0xbb   :  { %v152_v23 = vadd.f32 %v151_v15, %v144_v12  ;;  %v181_v24 = vadd.f32 %v180_v16, %v178_v1  ;;  %v187_v25 = vadd.f32 %v186_v17, %v179_v14  ;;  %v221_v26 = vrot.slane %v214_v20, 4 }
  0xbc   :  { %v147_v27 = vrot.slane %v146_v19, 2  ;;  %v216_v28 = vadd.f32 %v215_v21, %v213_v18  ;;  %v249_v29 = vsel %vm423_vm3, %v62_v5, 0.0  ;;  %v250_v30 = vrot.slane %v248_v22, 4 }
  0xbd   :  { %v153_v6 = vrot.slane %v152_v23, 2  ;;  %v182_v31 = vrot.slane %v181_v24, 2  ;;  %v188_v32 = vrot.slane %v187_v25, 2  ;;  %v222_v33 = vadd.f32 %v221_v26, %v214_v20 }
  0xbe   :  { %v148_v7 = vadd.f32 %v147_v27, %v146_v19  ;;  %v217_v34 = vrot.slane %v216_v28, 2  ;;  %v251_v35 = vadd.f32 %v250_v30, %v248_v22  ;;  %v256_v36 = vrot.slane %v249_v29, 4 }
  0xbf   :  { %v154_v8 = vadd.f32 %v153_v6, %v152_v23  ;;  %v183_v37 = vadd.f32 %v182_v31, %v181_v24  ;;  %v189_v38 = vadd.f32 %v188_v32, %v187_v25  ;;  %v223_v39 = vrot.slane %v222_v33, 2 }
  0xc0   :  { %v149_v40 = vrot.slane %v148_v7, 1  ;;  %v218_v41 = vadd.f32 %v217_v34, %v216_v28  ;;  %v252_v42 = vrot.slane %v251_v35, 2  ;;  %v257_v43 = vadd.f32 %v256_v36, %v249_v29 }
  0xc1   :  { %v155_v45 = vrot.slane %v154_v8, 1  ;;  %v184_v9 = vrot.slane %v183_v37, 1  ;;  %v190_v46 = vrot.slane %v189_v38, 1  ;;  %v224_v47 = vadd.f32 %v223_v39, %v222_v33 }
  0xc2   :  { %v150_v48 = vadd.f32 %v149_v40, %v148_v7  ;;  %v219_v49 = vrot.slane %v218_v41, 1  ;;  %v253_v51 = vadd.f32 %v252_v42, %v251_v35  ;;  %v258_v52 = vrot.slane %v257_v43, 2 }
  0xc3   :  { %v156_v53 = vadd.f32 %v155_v45, %v154_v8  ;;  %v185_v54 = vadd.f32 %v184_v9, %v183_v37  ;;  %v191_v55 = vadd.f32 %v190_v46, %v189_v38  ;;  %v225_v56 = vrot.slane %v224_v47, 1 }
  0xc4   :  { %v220_v57 = vadd.f32 %v219_v49, %v218_v41  ;;  %v254_v58 = vrot.slane %v253_v51, 1  ;;  %v259_v59 = vadd.f32 %v258_v52, %v257_v43 }
  0xc5   :  { %v159_v60 = vcombine.low %v150_v48, %v156_v53  ;;  %v194_v61 = vcombine.low %v185_v54, %v191_v55  ;;  %v226_v62 = vadd.f32 %v225_v56, %v224_v47 }
  0xc6   :  { %v255_v63 = vadd.f32 %v254_v58, %v253_v51  ;;  %v260_v0 = vrot.slane %v259_v59, 1 }
  0xc7   :  { %v166_v2 = vrot.slane %v159_v60, %v435_v44  ;;  %v201_v3 = vrot.slane %v194_v61, %v435_v44  ;;  %v229_v4 = vcombine.low %v220_v57, %v226_v62 }
  0xc8   :  { %v261_v10 = vadd.f32 %v260_v0, %v259_v59 }
  0xc9   :  { %v173_v11 = vrot.slane %v166_v2, %v435_v44  ;;  %v208_v1 = vrot.slane %v201_v3, %v435_v44  ;;  %v236_v5 = vrot.slane %v229_v4, %v435_v44 }
  0xca   :  { %v264_v12 = vcombine.low %v255_v63, %v261_v10 }
  0xcb   :  { %176 = vst.msk [vmem:[#allocation7 + $0x2] ss:$8 sm:$0x3] %vm441_vm4, %v173_v11  ;;  %211 = vst.msk [vmem:[#allocation7 + $0x3] ss:$8 sm:$0x3] %vm441_vm4, %v208_v1  ;;  %v243_v13 = vrot.slane %v236_v5, %v435_v44 }
  0xcc   :  { %v271_v14 = vrot.slane %v264_v12, %v435_v44 }
  0xcd   :  { %246 = vst.msk [vmem:[#allocation7 + $0x4] ss:$8 sm:$0x3] %vm441_vm4, %v243_v13 }
  0xce   :  { %v278_v15 = vrot.slane %v271_v14, %v435_v44 }
  0xd0   :  { %281 = vst.msk [vmem:[#allocation7 + $0x5] ss:$8 sm:$0x3] %vm441_vm4, %v278_v15 }
  0xd1   :  { %366 = shalt.err (!%p363_p0)
}
  0xd2   :  { %294 = dma.vmem_to_hbm [thread:$0]  %s292_s19, 256, %s487_s2, [#allocation4]  }
  0xd3   :  { %379 = dma.done.wait [#allocation4], 256  }
  0xd4   :  { %380 = vsyncadd [#allocation4], 4294967040 }
  0xd5   :  { %298 = vsyncpa [#allocation3], 1 }
  0xd6   :  { %299 = vsyncpa [#allocation6], 1 }
  0xd7   :  { %300 = vsyncpa [#allocation4], 1 }

</bundles_post_ra>
